<compile_context>
chip_gen: v6e
topology: v6e:2x2x1
jax: 0.10.0
libtpu: 0.0.40
codegen_flags: <defaults>
</compile_context>

<pallas_src>
import functools

import jax
import jax.numpy as jnp
from jax.experimental import pallas as pl
from jax.experimental.pallas import tpu as pltpu


def _round_up(x, m):
    return ((x + m - 1) // m) * m


def _vmem_limit_bytes():
    # Generation-aware VMEM limit: ~3/4 of physical, capped at 96 MiB.
    # v5e/v6e: 128 MiB physical -> 96 MiB; v7x: 64 MiB -> 48 MiB.
    try:
        cap = int(pltpu.get_tpu_info().vmem_capacity_bytes)
    except Exception:
        cap = 64 * 1024 * 1024
    return int(min(cap * 3 // 4, 96 * 1024 * 1024))


def _default_batch_shards(padded_batch):
    # Only shard the batch when there are 2 TensorCores per chip (v7x) and
    # each shard keeps >=16 dense sublane rows; v5e/v6e have a single TC and
    # sharding would only shrink the already tiny matmul M dimension.
    try:
        kind = jax.devices()[0].device_kind.lower()
    except Exception:
        kind = ""
    if "v7" in kind and padded_batch >= 32 and padded_batch % 32 == 0:
        return 2
    return 1


# ---------------------------------------------------------------------------
# Kernel 1: input projection xw = x @ [W1|W2]  (parallel over all T*B rows).
# Bias is deliberately NOT folded in: it is added in f32 in the recurrence so
# xw can be stored in bf16 without quantizing at the bias scale.
# ---------------------------------------------------------------------------
def _proj_kernel(x_ref, w_ref, xw_ref, *, matmul_dtype):
    x = x_ref[...].astype(matmul_dtype)        # no-op if caller already feeds bf16
    acc = jnp.dot(x, w_ref[...], preferred_element_type=jnp.float32)
    xw_ref[...] = acc.astype(xw_ref.dtype)


# ---------------------------------------------------------------------------
# Kernel 2: sequential recurrence over time blocks (time-major blocks).
# ---------------------------------------------------------------------------
def _recurrent_kernel(xw_ref, u_ref, b_ref, out_ref, h_ref, *,
                      tb, hidden_p, seq_len, mask_tail, matmul_dtype):
    # New batch shard starts at time-block 0 -> reset hidden state to zeros
    # (matches BaseRNN when hiddenState is None).
    @pl.when(pl.program_id(1) == 0)
    def _():
        h_ref[...] = jnp.zeros_like(h_ref)

    bs = h_ref.shape[0]
    # Hoist the bias broadcast once per grid step (f32 add inside the loop).
    bias = jnp.broadcast_to(b_ref[...], (bs, b_ref.shape[1]))
    h = h_ref[...]                                            # (bs, Hp) f32
    t0 = pl.program_id(1) * tb

    # tb is a small compile-time constant -> static fully-unrolled loop with
    # dense leading-axis xw_ref[i] / out_ref[i] accesses.
    for i in range(tb):
        # u_ref[...] is passed directly to the dot (not hoisted into vregs)
        # so the (Hp, 2Hp) RHS streams from VMEM to the MXU every step.
        pre = xw_ref[i].astype(jnp.float32) + bias + jnp.dot(
            h.astype(matmul_dtype), u_ref[...],
            preferred_element_type=jnp.float32)
        z = jax.nn.sigmoid(pre[:, :hidden_p])                 # gate (f32)
        c = jnp.tanh(pre[:, hidden_p:])                       # update (f32)
        h_new = c + z * (h - c)                               # == z*h + (1-z)*c
        if mask_tail:
            # Keep h clean past the true sequence end (tail of the last block).
            h = jnp.where(t0 + i < seq_len, h_new, h)
        else:
            h = h_new
        out_ref[i] = h.astype(out_ref.dtype)

    h_ref[...] = h


# ---------------------------------------------------------------------------
# Wrapper
# ---------------------------------------------------------------------------
def ugrnn_forward(x, w1, w2, u1, u2, bias_gate, bias_update, *,
                  matmul_dtype=jnp.bfloat16, time_block=None, batch_shards=None):
    """x: [B, T, D] float32 -> hiddenStates [B, T, H] float32."""
    B, T, D = x.shape
    H = w1.shape[1]

    md = jnp.dtype(matmul_dtype)
    f32 = jnp.float32

    # ---- lane-dense padding of the hidden dimension (biggest layout lever).
    Hp = _round_up(max(H, 128), 128)
    H2p = 2 * Hp

    # Fused + zero-padded parameters; padded h columns stay exactly zero.
    w_cat = jnp.zeros((D, H2p), f32)
    w_cat = w_cat.at[:, :H].set(w1).at[:, Hp:Hp + H].set(w2).astype(md)
    u_cat = jnp.zeros((Hp, H2p), f32)
    u_cat = u_cat.at[:H, :H].set(u1).at[:H, Hp:Hp + H].set(u2).astype(md)
    b_cat = jnp.zeros((1, H2p), f32)
    b_cat = b_cat.at[:, :H].set(bias_gate).at[:, Hp:Hp + H].set(bias_update)

    # ---- sublane-dense batch padding and one time-major transpose of x.
    Bp = _round_up(B, 8)
    if Bp != B:
        x = jnp.pad(x, ((0, Bp - B), (0, 0), (0, 0)))
    x_tm = jnp.transpose(x, (1, 0, 2))                        # [T, Bp, D]
    x2d = x_tm.reshape(T * Bp, D)

    M = T * Bp
    x_bytes = jnp.dtype(x.dtype).itemsize
    md_bytes = md.itemsize
    vmem_limit = _vmem_limit_bytes()
    budget = vmem_limit // 2                                  # pipeline headroom

    # ---- Phase 1: xw = x @ [W1|W2] for all (t, b) rows (parallel GEMM).
    # N (=H2p) tiling keeps the weight/output blocks bounded for large H.
    if H2p <= 512:
        tn = H2p
    elif H2p % 512 == 0:
        tn = 512
    else:
        tn = 256                                              # H2p is a multiple of 256

    tm = 128
    for cand in (2048, 1024, 512, 256, 128):
        need = 2 * cand * D * x_bytes + 2 * cand * tn * md_bytes + 2 * D * tn * md_bytes
        if need <= budget:
            tm = cand
            break
    if M <= tm:
        tm = M                                                # single full block
    elif M <= 2 * tm:
        tm = _round_up((M + 1) // 2, 16)                      # >=2 blocks for v7x megacore

    grid_m = pl.cdiv(M, tm)
    grid_n = pl.cdiv(H2p, tn)

    xw2d = pl.pallas_call(
        functools.partial(_proj_kernel, matmul_dtype=matmul_dtype),
        out_shape=jax.ShapeDtypeStruct((M, H2p), md),         # bf16 on the fast path
        grid_spec=pltpu.PrefetchScalarGridSpec(
            num_scalar_prefetch=0,
            grid=(grid_n, grid_m),                            # M fastest: weight N-tile stays resident
            in_specs=[
                pl.BlockSpec((tm, D), lambda jn, im: (im, 0)),   # x rows
                pl.BlockSpec((D, tn), lambda jn, im: (0, jn)),   # [W1|W2] N-tile
            ],
            out_specs=pl.BlockSpec((tm, tn), lambda jn, im: (im, jn)),
        ),
        compiler_params=pltpu.CompilerParams(
            dimension_semantics=("parallel", "parallel"),
            vmem_limit_bytes=vmem_limit,
        ),
        cost_estimate=pl.CostEstimate(
            flops=2 * M * D * H2p,
            transcendentals=0,
            bytes_accessed=M * D * x_bytes + D * H2p * md_bytes + M * H2p * md_bytes,
        ),
    )(x2d, w_cat)
    xw = xw2d.reshape(T, Bp, H2p)                             # time-major, free reshape

    # ---- Phase 2: sequential recurrence (h @ [U1|U2] + f32 elementwise).
    if time_block is None:
        if T <= 32:
            tb = T
        else:
            tb = 32
            for cand in (32, 16, 8):                          # prefer a divisor (no tail)
                if T % cand == 0:
                    tb = cand
                    break
    else:
        tb = int(time_block)
    mask_tail = (T % tb) != 0
    n_tblocks = pl.cdiv(T, tb)

    if batch_shards is None:
        batch_shards = _default_batch_shards(Bp)
    assert Bp % batch_shards == 0, "batch_shards must divide the padded batch"
    bs = Bp // batch_shards
    assert batch_shards == 1 or bs % 16 == 0, \
        "each batch shard must keep a dense multiple-of-16 sublane count"

    out_tm = pl.pallas_call(
        functools.partial(_recurrent_kernel, tb=tb, hidden_p=Hp, seq_len=T,
                          mask_tail=mask_tail, matmul_dtype=matmul_dtype),
        out_shape=jax.ShapeDtypeStruct((T, Bp, Hp), jnp.float32),
        grid_spec=pltpu.PrefetchScalarGridSpec(
            num_scalar_prefetch=0,
            grid=(batch_shards, n_tblocks),
            in_specs=[
                pl.BlockSpec((tb, bs, H2p), lambda b, t: (t, b, 0)),  # xw (time-major)
                pl.BlockSpec((Hp, H2p), lambda b, t: (0, 0)),         # [U1|U2]
                pl.BlockSpec((1, H2p), lambda b, t: (0, 0)),          # [b_g|b_u] (f32)
            ],
            out_specs=pl.BlockSpec((tb, bs, Hp), lambda b, t: (t, b, 0)),
            scratch_shapes=[pltpu.VMEM((bs, Hp), jnp.float32)],       # hidden state
        ),
        compiler_params=pltpu.CompilerParams(
            # batch shards are independent (megacore on v7x); time is sequential
            dimension_semantics=("parallel", "arbitrary"),
            vmem_limit_bytes=vmem_limit,
        ),
        cost_estimate=pl.CostEstimate(
            flops=2 * T * Bp * Hp * H2p,
            transcendentals=T * Bp * H2p,
            bytes_accessed=(T * Bp * H2p * md_bytes + Hp * H2p * md_bytes
                            + H2p * 4 + T * Bp * Hp * 4),
        ),
    )(xw, u_cat, b_cat)

    # Drop padding and return batch-first [B, T, H] (single fused slice+transpose).
    return jnp.transpose(out_tm[:, :B, :H], (1, 0, 2))


# ---------------------------------------------------------------------------
# Pure-JAX reference mirroring the PyTorch UGRNNLRCell / BaseRNN loop.
# ---------------------------------------------------------------------------
def ugrnn_reference(x, w1, w2, u1, u2, bias_gate, bias_update):
    B, T, D = x.shape
    H = w1.shape[1]
    h = jnp.zeros((B, H), jnp.float32)
    outs = []
    for t in range(T):
        xt = x[:, t, :]
        z = jax.nn.sigmoid(xt @ w1 + h @ u1 + bias_gate)
        c = jnp.tanh(xt @ w2 + h @ u2 + bias_update)
        h = z * h + (1.0 - z) * c
        outs.append(h)
    return jnp.stack(outs, axis=1)


if __name__ == "__main__":
    # Small shapes consistent with the module: batch=2, seq=8, input=16, hidden=32
    B, T, D, H = 2, 8, 16, 32

    key = jax.random.PRNGKey(0)
    kx, kw1, kw2, ku1, ku2 = jax.random.split(key, 5)

    x = jax.random.normal(kx, (B, T, D), jnp.float32)

    # Parameter init mirroring 0.1 * randn(...) and ones biases.
    w1 = 0.1 * jax.random.normal(kw1, (D, H), jnp.float32)
    w2 = 0.1 * jax.random.normal(kw2, (D, H), jnp.float32)
    u1 = 0.1 * jax.random.normal(ku1, (H, H), jnp.float32)
    u2 = 0.1 * jax.random.normal(ku2, (H, H), jnp.float32)
    bias_gate = jnp.ones((1, H), jnp.float32)
    bias_update = jnp.ones((1, H), jnp.float32)

    ref = ugrnn_reference(x, w1, w2, u1, u2, bias_gate, bias_update)

    # Exactness check: f32 MXU operands / f32 xw storage, tight tolerance.
    out_f32 = ugrnn_forward(x, w1, w2, u1, u2, bias_gate, bias_update,
                            matmul_dtype=jnp.float32)
    out_f32 = jax.block_until_ready(out_f32)
    assert out_f32.shape == (B, T, H)
    assert jnp.allclose(out_f32, ref, atol=1e-4, rtol=1e-4), "f32 mismatch vs reference"

    # Performance path: bf16 MXU operands + bf16 xw, f32 accumulation/state/bias.
    out_bf16 = ugrnn_forward(x, w1, w2, u1, u2, bias_gate, bias_update,
                             matmul_dtype=jnp.bfloat16)
    out_bf16 = jax.block_until_ready(out_bf16)
    assert out_bf16.shape == (B, T, H)
    assert jnp.allclose(out_bf16, ref, atol=5e-2, rtol=0.0), "bf16 mismatch vs reference"

    print("KERNEL_OK")
</pallas_src>

<mosaic_0001>
module attributes {stable_mosaic.version = 11 : i64} {
  func.func @_proj_kernel(%arg0: i32, %arg1: i32, %arg2: memref<64x16xf32, #tpu.memory_space<vmem>>, %arg3: memref<16x256xf32, #tpu.memory_space<vmem>>, %arg4: memref<64x256xf32, #tpu.memory_space<vmem>>) attributes {dimension_semantics = [#tpu.dimension_semantics<parallel>, #tpu.dimension_semantics<parallel>], iteration_bounds = array<i64: 1, 1>, scalar_prefetch = 0 : i64, scratch_operands = 0 : i64, tpu.core_type = #tpu.core_type<tc>, window_params = [{transform_indices = @transform_0, window_bounds = array<i64: 64, 16>}, {transform_indices = @transform_1, window_bounds = array<i64: 16, 256>}, {transform_indices = @transform_2, window_bounds = array<i64: 64, 256>}]} {
    %c0 = arith.constant 0 : index
    %c0_0 = arith.constant 0 : index
    %0 = vector.load %arg2[%c0, %c0_0] : memref<64x16xf32, #tpu.memory_space<vmem>>, vector<64x16xf32>
    %c0_1 = arith.constant 0 : index
    %c0_2 = arith.constant 0 : index
    %1 = vector.load %arg3[%c0_1, %c0_2] : memref<16x256xf32, #tpu.memory_space<vmem>>, vector<16x256xf32>
    %cst = arith.constant dense<0.000000e+00> : vector<64x256xf32>
    %2 = tpu.matmul %0, %1, %cst {dimension_numbers = #tpu.dot_dimension_numbers<[1], [0], [0], [1], [0, 0, 1, 1], [], []>} : vector<64x16xf32>, vector<16x256xf32>, vector<64x256xf32> -> vector<64x256xf32>
    %c0_3 = arith.constant 0 : index
    %c0_4 = arith.constant 0 : index
    %3 = vector.load %arg4[%c0_3, %c0_4] : memref<64x256xf32, #tpu.memory_space<vmem>>, vector<64x256xf32>
    tpu.vector_store %arg4[%c0_3, %c0_4], %2 {strides = array<i32>} : memref<64x256xf32, #tpu.memory_space<vmem>>, vector<64x256xf32>,
    return
  }
  func.func @transform_0(%arg0: i32, %arg1: i32) -> (i32, i32) {
    %c0_i32 = arith.constant 0 : i32
    %c0_i32_0 = arith.constant 0 : i32
    return %arg1, %c0_i32 : i32, i32
  }
  func.func @transform_1(%arg0: i32, %arg1: i32) -> (i32, i32) {
    %c0_i32 = arith.constant 0 : i32
    %c0_i32_0 = arith.constant 0 : i32
    return %c0_i32, %arg0 : i32, i32
  }
  func.func @transform_2(%arg0: i32, %arg1: i32) -> (i32, i32) {
    %c0_i32 = arith.constant 0 : i32
    return %arg1, %arg0 : i32, i32
  }
}

</mosaic_0001>

<bundles_post_ra>
// kernel: tpu_custom_call.1
= control target key start
LH: loop header
LB: loop body
LE: loop exit
PB: predicated region body
PF: predicated region fallthrough
CT: control target
= control target key end

     0   :  { %vm24_vm0 = vcmask 130048   ;;  %s298_s0 = inlined_call_operand.vmem [shape: f32[64,16], index: 0, kind: input, shape index: {}]   ;;  %s299_s1 = inlined_call_operand.vmem [shape: f32[16,256], index: 1, kind: input, shape index: {}]   ;;  %s300_s2 = inlined_call_operand.hbm [shape: f32[64,256], index: 2, kind: output, shape index: {}]  }
   0x1   :  { %v23_v0 = vld [vmem:[%s299_s1 + $0x18] sm:$0xff]  ;;  %v22_v1 = vld [vmem:[%s299_s1 + $0x10] sm:$0xff]  ;;  %v21_v2 = vld [vmem:[%s299_s1 + $0x8] sm:$0xff] }
   0x2   :  { %77 = vmatprep.subr.mxu0 %v23_v0  ;;  %202 = vmatprep.subr.mxu1 %v23_v0  ;;  %v20_v3 = vld [vmem:[%s299_s1] sm:$0xff] }
   0x3   :  { %78 = vmatpush1.msra.mxu0 %v22_v1  ;;  %204 = vmatpush1.msra.mxu1 %v22_v1  ;;  %v12_v4 = vld [vmem:[%s298_s0] sm:$0xff] }
   0x4   :  { %79 = vmatprep.subr.mxu0 %v21_v2  ;;  %203 = vmatprep.subr.mxu1 %v21_v2  ;;  %v16_v5 = vld [vmem:[%s298_s0 + $0x20] sm:$0xff] }
   0x5   :  { %80 = vmatpush1.msra.mxu0 %v20_v3  ;;  %205 = vmatpush1.msra.mxu1 %v20_v3 }
   0x6   :  { %7 = vsyncpa [#allocation3], 0  ;;  %v232_v6 = vmov 0.0   ;;  %v13_v7 = vld [vmem:[%s298_s0 + $0x8] sm:$0xff]  ;;  %v14_v9 = vld [vmem:[%s298_s0 + $0x10] sm:$0xff] }
   0x7   :  { %113 = vmatprep.mubr.f32.mxu0 %v232_v6  ;;  %137 = vmatprep.mubr.f32.mxu1 %v232_v6  ;;  %v17_v8 = vld [vmem:[%s298_s0 + $0x28] sm:$0xff]  ;;  %v18_v10 = vld [vmem:[%s298_s0 + $0x30] sm:$0xff]  ;;  %v15_v11 = vld [vmem:[%s298_s0 + $0x18] sm:$0xff] }
   0x8   :  { %194 = vmatmul.mubr.msk.f32.vlgmr.msra.gmra.mxu0 %vm24_vm0, %v12_v4  ;;  %198 = vmatmul.mubr.msk.f32.vlgmr.msra.gmra.mxu1 %vm24_vm0, %v16_v5  ;;  %v19_v12 = vld [vmem:[%s298_s0 + $0x38] sm:$0xff]  ;;  %s233_s0 = smov [#allocation2]  }
   0x9   :  { %119 = vmatprep.mubr.f32.mxu0 %v232_v6  ;;  %143 = vmatprep.mubr.f32.mxu1 %v232_v6  ;;  %s183_s4 = sshll.u32 %s233_s0, 4  ;;  %s184_s4 = int_to_ptr.vmem [resolvable:$true] %s183_s4 }
   0xa   :  { %s210_s5 = scalar_lea.vmem %s184_s4, 2048  ;;  %p215_p1 = scmp.lt.s32.totalorder %s184_s4, %s184_s4 }
   0xb   :  { %p211_p0 = scmp.ne.s32.totalorder %s184_s4, %s210_s5  ;;  %p216_p2 = scmp.lt.s32.totalorder %s210_s5, %s210_s5 }
   0xc   :  { %195 = vmatmul.mubr.msk.f32.gmra.mxu0 %vm24_vm0, %v13_v7  ;;  %199 = vmatmul.mubr.msk.f32.gmra.mxu1 %vm24_vm0, %v17_v8 }
   0xd   :  { %125 = vmatprep.mubr.f32.mxu0 %v232_v6  ;;  %149 = vmatprep.mubr.f32.mxu1 %v232_v6  ;;  %p217_p3 = por %p216_p2, %p215_p1 }
   0xf   :  { %p218_p4 = pnand %p217_p3, %p211_p0 }
  0x10   :  { %196 = vmatmul.mubr.msk.f32.gmra.mxu0 %vm24_vm0, %v14_v9  ;;  %200 = vmatmul.mubr.msk.f32.gmra.mxu1 %vm24_vm0, %v18_v10 }
  0x11   :  { %131 = vmatprep.mubr.f32.mxu0 %v232_v6  ;;  %155 = vmatprep.mubr.f32.mxu1 %v232_v6 }
  0x14   :  { %197 = vmatmul.mubr.msk.f32.gmra.mxu0 %vm24_vm0, %v15_v11  ;;  %201 = vmatmul.mubr.msk.f32.gmra.mxu1 %vm24_vm0, %v19_v12 }
  0xc8   :  { %v115_v13 = vpop.f32.mrf.mxu0  ;;  %v139_v14 = vpop.f32.mrf.mxu1 }
  0xc9   :  { %162 = vst [vmem:[#allocation2] sm:$0xff] %v115_v13  ;;  %170 = vst [vmem:[#allocation2 + $0x40] sm:$0xff] %v139_v14 }
  0xca   :  { %v117_v15 = vpop.f32.mrf.mxu0  ;;  %v141_v16 = vpop.f32.mrf.mxu1 }
  0xcb   :  { %163 = vst [vmem:[#allocation2 + $0x8] sm:$0xff] %v117_v15  ;;  %171 = vst [vmem:[#allocation2 + $0x48] sm:$0xff] %v141_v16 }
  0xcc   :  { %v121_v17 = vpop.f32.mrf.mxu0  ;;  %v145_v18 = vpop.f32.mrf.mxu1 }
  0xcd   :  { %164 = vst [vmem:[#allocation2 + $0x10] sm:$0xff] %v121_v17  ;;  %172 = vst [vmem:[#allocation2 + $0x50] sm:$0xff] %v145_v18 }
  0xce   :  { %v123_v19 = vpop.f32.mrf.mxu0  ;;  %v147_v20 = vpop.f32.mrf.mxu1 }
  0xcf   :  { %165 = vst [vmem:[#allocation2 + $0x18] sm:$0xff] %v123_v19  ;;  %173 = vst [vmem:[#allocation2 + $0x58] sm:$0xff] %v147_v20 }
  0xd0   :  { %v127_v21 = vpop.f32.mrf.mxu0  ;;  %v151_v22 = vpop.f32.mrf.mxu1 }
  0xd1   :  { %166 = vst [vmem:[#allocation2 + $0x20] sm:$0xff] %v127_v21  ;;  %174 = vst [vmem:[#allocation2 + $0x60] sm:$0xff] %v151_v22 }
  0xd2   :  { %v129_v23 = vpop.f32.mrf.mxu0  ;;  %v153_v24 = vpop.f32.mrf.mxu1 }
  0xd3   :  { %167 = vst [vmem:[#allocation2 + $0x28] sm:$0xff] %v129_v23  ;;  %175 = vst [vmem:[#allocation2 + $0x68] sm:$0xff] %v153_v24 }
  0xd4   :  { %v133_v25 = vpop.f32.mrf.mxu0  ;;  %v157_v26 = vpop.f32.mrf.mxu1 }
  0xd5   :  { %168 = vst [vmem:[#allocation2 + $0x30] sm:$0xff] %v133_v25  ;;  %176 = vst [vmem:[#allocation2 + $0x70] sm:$0xff] %v157_v26 }
  0xd6   :  { %v135_v27 = vpop.f32.mrf.mxu0  ;;  %v159_v28 = vpop.f32.mrf.mxu1 }
  0xd7   :  { %169 = vst [vmem:[#allocation2 + $0x38] sm:$0xff] %v135_v27  ;;  %177 = vst [vmem:[#allocation2 + $0x78] sm:$0xff] %v159_v28 }
  0xd8   :  { %221 = shalt.err (!%p218_p4)
}
  0xd9   :  { %s234_s6 = smov 256   ;;  %s235_s7 = smov 16  }
  0xda   :  { %189 = dma.vmem_to_hbm [thread:$0]  %s184_s4, 2048, %s300_s2, [#allocation3], %s234_s6, %s234_s6, %s235_s7  }
  0xdb   :  { %230 = dma.done.wait [#allocation3], 2048  }
  0xdc   :  { %231 = vsyncadd [#allocation3], 4294965248 }
  0xdd   :  { %193 = vsyncpa [#allocation3], 1 }

</bundles_post_ra>
